<compile_context>
chip_gen: v5e
topology: v5e:2x2
jax: 0.10.0
libtpu: 0.0.40
codegen_flags: <defaults>
</compile_context>

<pallas_src>
import functools

import jax
import jax.numpy as jnp
from jax import lax
from jax.experimental import pallas as pl
from jax.experimental.pallas import tpu as pltpu


def _mac_kernel(x_ref, w_ref, *rest, num_cms, num_neurons, prev_cms,
                act_min, act_max, sig_lambda, sig_phi, sig_chi, min_fam,
                training):
    """One grid step == one MAC.

    x_ref     : VMEM (1, B, D)    flattened receptive-field input
    w_ref     : VMEM (1, D, C*N)  weights, pre-transposed to (D, C*N)
    noise_ref : VMEM (1, B, C*N)  host-sampled Gumbel noise (training only)
    out_ref   : VMEM (1, B, C*N)  one-hot codes, lane-dense single store
    """
    if training:
        noise_ref, out_ref = rest
    else:
        (out_ref,) = rest

    C, N = num_cms, num_neurons
    CN = C * N

    x = x_ref[0]                                        # (B, D) f32
    B = x.shape[0]

    # --- activation gate: active_input_macs = sum(x) / prev_layer_num_cms_per_mac
    total = jnp.sum(x, axis=-1, keepdims=True)          # (B, 1)
    active_macs = total / prev_cms
    is_active = jnp.logical_and(active_macs <= act_max,
                                active_macs >= act_min).astype(jnp.float32)

    # --- input normalization (torch.div + nan_to_num)
    xn = jnp.nan_to_num(x / total)                      # (B, D)

    # --- single fused MXU matmul against the (D, C*N) weight slab
    scores = jnp.dot(xn, w_ref[0], preferred_element_type=jnp.float32)   # (B, CN)

    # One hoisted iota over the fused lane axis.  Kept in f32 so every
    # reduction below stays on plain f32 paths (ints < 2^24 are exact in f32).
    lane = lax.broadcasted_iota(jnp.int32, (B, CN), 1).astype(jnp.float32)
    seg_masks = [jnp.logical_and(lane >= c * N, lane < (c + 1) * N)
                 for c in range(C)]                     # per-CM lane masks (shared)

    if training:
        # familiarity: max over neurons per CM, averaged over CMs -> eta (B, 1)
        fam_sum = jnp.zeros((B, 1), jnp.float32)
        for c in range(C):
            fam_sum = fam_sum + jnp.max(
                jnp.where(seg_masks[c], scores, -jnp.inf), axis=-1, keepdims=True)
        avg_fam = fam_sum * (1.0 / C)
        eta = jnp.maximum((avg_fam - min_fam) / (1.0 - min_fam), 0.0) * sig_chi

        # CSA logits (same +1e-5 epsilon semantics as the torch reference),
        # then categorical sampling via Gumbel-max with pre-sampled noise.
        logits = jnp.log(eta / (1.0 + jnp.exp(-sig_lambda * scores + sig_phi)) + 1e-5)
        pick = logits + noise_ref[0]                    # (B, CN)
    else:
        pick = scores                                   # eval: argmax over neurons

    # per-CM argmax (first occurrence) -> fused one-hot, built at full lane width
    onehot = jnp.zeros((B, CN), jnp.float32)
    for c in range(C):
        pm = jnp.where(seg_masks[c], pick, -jnp.inf)
        mx = jnp.max(pm, axis=-1, keepdims=True)                        # (B, 1)
        idx = jnp.min(jnp.where(pm == mx, lane, float(CN)),
                      axis=-1, keepdims=True)                           # (B, 1)
        onehot = onehot + (lane == idx).astype(jnp.float32)

    # single lane-dense store
    out_ref[0] = onehot * is_active


def _mac_pallas(x_mbd, w_mdcn, noise_mbcn, *, num_cms, num_neurons, prev_cms,
                act_min, act_max, sig_lambda, sig_phi, sig_chi, min_fam,
                training):
    """Gridded pallas_call over the MAC axis (M MACs, one grid step each)."""
    M, B, D = x_mbd.shape
    CN = num_cms * num_neurons

    kernel = functools.partial(
        _mac_kernel,
        num_cms=int(num_cms), num_neurons=int(num_neurons),
        prev_cms=float(prev_cms),
        act_min=float(act_min), act_max=float(act_max),
        sig_lambda=float(sig_lambda), sig_phi=float(sig_phi),
        sig_chi=float(sig_chi), min_fam=float(min_fam),
        training=bool(training))

    in_specs = [
        pl.BlockSpec((1, B, D), lambda m: (m, 0, 0)),     # x (per-MAC slice)
        pl.BlockSpec((1, D, CN), lambda m: (m, 0, 0)),    # weights (streamed)
    ]
    args = [x_mbd, w_mdcn]
    if training:
        in_specs.append(pl.BlockSpec((1, B, CN), lambda m: (m, 0, 0)))  # gumbel
        args.append(noise_mbcn)

    return pl.pallas_call(
        kernel,
        out_shape=jax.ShapeDtypeStruct((M, B, CN), jnp.float32),
        grid=(M,),
        in_specs=in_specs,
        out_specs=pl.BlockSpec((1, B, CN), lambda m: (m, 0, 0)),
        compiler_params=pltpu.CompilerParams(
            dimension_semantics=("parallel",)),            # megacore-shardable
    )(*args)


def mac_forward(x4d, weights, key=None, *, prev_cms, act_min, act_max,
                sig_lambda, sig_phi, sig_chi, min_fam, training):
    """Single-MAC forward matching MAC.forward.

    x4d     : (B, num_input_macs, cms_in, neu_in) f32
    weights : (num_cms, num_inputs, num_neurons) f32
    returns : (B, num_cms, num_neurons) f32
    """
    B = x4d.shape[0]
    C, D, N = weights.shape
    x_mbd = x4d.reshape(1, B, D).astype(jnp.float32)
    w_mdcn = jnp.transpose(weights.astype(jnp.float32), (1, 0, 2)).reshape(1, D, C * N)
    noise = (jax.random.gumbel(key, (1, B, C * N), dtype=jnp.float32)
             if training else None)
    out = _mac_pallas(x_mbd, w_mdcn, noise,
                      num_cms=C, num_neurons=N, prev_cms=prev_cms,
                      act_min=act_min, act_max=act_max,
                      sig_lambda=sig_lambda, sig_phi=sig_phi,
                      sig_chi=sig_chi, min_fam=min_fam, training=training)
    return out.reshape(B, C, N)


def mac_layer_forward(x5d, weights_stack, key=None, *, prev_cms, act_min,
                      act_max, sig_lambda, sig_phi, sig_chi, min_fam, training):
    """Layer-batched forward: M MACs in ONE gridded pallas_call.

    x5d           : (M, B, num_input_macs, cms_in, neu_in) — per-MAC receptive
                    fields (input_filter gather done outside the kernel).
    weights_stack : (M, num_cms, num_inputs, num_neurons)
    returns       : (M, B, num_cms, num_neurons)
    """
    M, B = x5d.shape[:2]
    _, C, D, N = weights_stack.shape
    x_mbd = x5d.reshape(M, B, D).astype(jnp.float32)
    w_mdcn = jnp.transpose(weights_stack.astype(jnp.float32),
                           (0, 2, 1, 3)).reshape(M, D, C * N)
    noise = (jax.random.gumbel(key, (M, B, C * N), dtype=jnp.float32)
             if training else None)
    out = _mac_pallas(x_mbd, w_mdcn, noise,
                      num_cms=C, num_neurons=N, prev_cms=prev_cms,
                      act_min=act_min, act_max=act_max,
                      sig_lambda=sig_lambda, sig_phi=sig_phi,
                      sig_chi=sig_chi, min_fam=min_fam, training=training)
    return out.reshape(M, B, C, N)


def _ref_parts(x4d, w, prev_cms, act_min, act_max):
    """Pure-JAX reference pieces for the deterministic eval path."""
    B = x4d.shape[0]
    C, D, N = w.shape
    active = x4d.sum(axis=(1, 2, 3)) / prev_cms
    is_active = ((active <= act_max) & (active >= act_min)).astype(jnp.float32)
    xf = x4d.reshape(B, D)
    xf = jnp.nan_to_num(xf / xf.sum(-1, keepdims=True))
    scores = jnp.einsum('bi,cin->bcn', xf, w,
                        precision=jax.lax.Precision.HIGHEST)
    return scores, is_active


if __name__ == "__main__":
    key = jax.random.PRNGKey(0)

    # Small shapes consistent with MAC.__init__ / forward:
    B = 2                 # batch
    num_macs_prev = 4     # len(input_filter)  (receptive field size)
    cms_in = 4            # num_cms_per_mac_in_input == prev_layer_num_cms_per_mac
    neu_in = 8            # num_neurons_per_cm_in_input
    C = 4                 # num_cms (this MAC)
    N = 8                 # num_neurons per CM (this MAC)
    D = num_macs_prev * cms_in * neu_in   # 128 = num_inputs

    k_w, k_idx, k_noise, k_lw, k_lidx = jax.random.split(key, 5)

    # torch.rand((num_cms, num_inputs, num_neurons)) equivalent, deterministic
    weights = jax.random.uniform(k_w, (C, D, N), dtype=jnp.float32)

    # Input: sparse code (one active neuron per (mac, cm)), shape (B, macs, cms, neu)
    on_idx = jax.random.randint(k_idx, (B, num_macs_prev, cms_in), 0, neu_in)
    x = (on_idx[..., None] == jnp.arange(neu_in)).astype(jnp.float32)

    hp = dict(
        prev_cms=cms_in,
        act_min=0.2 * num_macs_prev,   # __init__ scales thresholds by input_num_macs
        act_max=1.0 * num_macs_prev,
        sig_lambda=28.0,
        sig_phi=5.0,
        sig_chi=2.5,
        min_fam=0.2,
    )

    # Eval path (deterministic: argmax over neurons per CM)
    out_eval = mac_forward(x, weights, training=False, **hp)
    # Training path (CSA categorical sampling via Gumbel-max, host-sampled noise)
    out_train = mac_forward(x, weights, key=k_noise, training=True, **hp)

    # Layer-batched demo: 4 MACs in one gridded, megacore-parallel pallas_call.
    M = 4
    w_layer = jax.random.uniform(k_lw, (M, C, D, N), dtype=jnp.float32)
    li = jax.random.randint(k_lidx, (M, B, num_macs_prev, cms_in), 0, neu_in)
    x_layer = (li[..., None] == jnp.arange(neu_in)).astype(jnp.float32)
    out_layer = mac_layer_forward(x_layer, w_layer, training=False, **hp)

    jax.block_until_ready((out_eval, out_train, out_layer))

    # ---- sanity checks -----------------------------------------------------
    ref_scores, is_act = _ref_parts(x, weights, hp["prev_cms"],
                                    hp["act_min"], hp["act_max"])
    assert out_eval.shape == (B, C, N) and out_train.shape == (B, C, N)

    # each (b, c) slice of eval output is one-hot gated by is_active
    assert jnp.allclose(out_eval.sum(-1), jnp.broadcast_to(is_act[:, None], (B, C)))
    # the chosen neuron is (numerically) the argmax of the reference scores
    sel = jnp.argmax(out_eval, axis=-1)
    sel_score = jnp.take_along_axis(ref_scores, sel[..., None], axis=-1)[..., 0]
    gap = ref_scores.max(-1) - sel_score
    assert jnp.all(jnp.where(is_act[:, None] > 0, gap, 0.0) <= 1e-4), \
        "eval argmax mismatch vs reference"

    # training output: strict {0,1} one-hots gated by is_active
    assert jnp.all((out_train == 0.0) | (out_train == 1.0))
    assert jnp.allclose(out_train.sum(-1), jnp.broadcast_to(is_act[:, None], (B, C)))

    # layer-batched call matches per-MAC calls exactly (same deterministic math)
    out_single = jnp.stack([mac_forward(x_layer[m], w_layer[m],
                                        training=False, **hp) for m in range(M)])
    assert jnp.allclose(out_layer, out_single), "layer-batched vs per-MAC mismatch"

    # TODO(synk): self.stored_codes is a host-side Python-set side effect
    # (bookkeeping of sampled codes); derive it on host from the returned codes.

    print("KERNEL_OK")
</pallas_src>

<mosaic_0001>
module attributes {stable_mosaic.version = 11 : i64} {
  func.func @_mac_kernel(%arg0: i32, %arg1: memref<1x2x128xf32, #tpu.memory_space<vmem>>, %arg2: memref<1x128x32xf32, #tpu.memory_space<vmem>>, %arg3: memref<1x2x32xf32, #tpu.memory_space<vmem>>) attributes {dimension_semantics = [#tpu.dimension_semantics<parallel>], iteration_bounds = array<i64: 1>, scalar_prefetch = 0 : i64, scratch_operands = 0 : i64, tpu.core_type = #tpu.core_type<tc>, window_params = [{transform_indices = @transform_0, window_bounds = array<i64: 1, 2, 128>}, {transform_indices = @transform_1, window_bounds = array<i64: 1, 128, 32>}, {transform_indices = @transform_2, window_bounds = array<i64: 1, 2, 32>}]} {
    %c0 = arith.constant 0 : index
    %c0_0 = arith.constant 0 : index
    %c0_1 = arith.constant 0 : index
    %0 = vector.load %arg1[%c0, %c0_0, %c0_1] : memref<1x2x128xf32, #tpu.memory_space<vmem>>, vector<1x2x128xf32>
    %1 = vector.shape_cast %0 : vector<1x2x128xf32> to vector<2x128xf32>
    %cst = arith.constant dense<0.000000e+00> : vector<2xf32>
    %2 = vector.multi_reduction <add>, %1, %cst [1] : vector<2x128xf32> to vector<2xf32>
    %3 = vector.shape_cast %2 : vector<2xf32> to vector<2x1xf32>
    %cst_2 = arith.constant 4.000000e+00 : f32
    %4 = vector.broadcast %cst_2 : f32 to vector<2x1xf32>
    %5 = arith.divf %3, %4 : vector<2x1xf32>
    %cst_3 = arith.constant 4.000000e+00 : f32
    %6 = vector.broadcast %cst_3 : f32 to vector<2x1xf32>
    %7 = arith.cmpf ole, %5, %6 : vector<2x1xf32>
    %cst_4 = arith.constant 8.000000e-01 : f32
    %8 = vector.broadcast %cst_4 : f32 to vector<2x1xf32>
    %9 = arith.cmpf oge, %5, %8 : vector<2x1xf32>
    %10 = arith.andi %7, %9 : vector<2x1xi1>
    %11 = arith.extui %10 : vector<2x1xi1> to vector<2x1xi32>
    %12 = arith.sitofp %11 : vector<2x1xi32> to vector<2x1xf32>
    %13 = vector.broadcast %3 : vector<2x1xf32> to vector<2x128xf32>
    %14 = arith.divf %1, %13 : vector<2x128xf32>
    %15 = arith.cmpf one, %14, %14 : vector<2x128xf32>
    %cst_5 = arith.constant 0.000000e+00 : f32
    %16 = vector.broadcast %cst_5 : f32 to vector<2x128xf32>
    %17 = arith.select %15, %16, %14 : vector<2x128xi1>, vector<2x128xf32>
    %cst_6 = arith.constant 0x7F800000 : f32
    %18 = vector.broadcast %cst_6 : f32 to vector<2x128xf32>
    %19 = arith.cmpf oeq, %17, %18 : vector<2x128xf32>
    %cst_7 = arith.constant 3.40282347E+38 : f32
    %20 = vector.broadcast %cst_7 : f32 to vector<2x128xf32>
    %21 = arith.select %19, %20, %17 : vector<2x128xi1>, vector<2x128xf32>
    %cst_8 = arith.constant 0xFF800000 : f32
    %22 = vector.broadcast %cst_8 : f32 to vector<2x128xf32>
    %23 = arith.cmpf oeq, %21, %22 : vector<2x128xf32>
    %cst_9 = arith.constant -3.40282347E+38 : f32
    %24 = vector.broadcast %cst_9 : f32 to vector<2x128xf32>
    %25 = arith.select %23, %24, %21 : vector<2x128xi1>, vector<2x128xf32>
    %c0_10 = arith.constant 0 : index
    %c0_11 = arith.constant 0 : index
    %c0_12 = arith.constant 0 : index
    %26 = vector.load %arg2[%c0_10, %c0_11, %c0_12] : memref<1x128x32xf32, #tpu.memory_space<vmem>>, vector<1x128x32xf32>
    %27 = vector.shape_cast %26 : vector<1x128x32xf32> to vector<128x32xf32>
    %cst_13 = arith.constant dense<0.000000e+00> : vector<2x32xf32>
    %28 = tpu.matmul %25, %27, %cst_13 {dimension_numbers = #tpu.dot_dimension_numbers<[1], [0], [0], [1], [0, 0, 1, 1], [], []>} : vector<2x128xf32>, vector<128x32xf32>, vector<2x32xf32> -> vector<2x32xf32>
    %29 = tpu.iota {dimensions = array<i32: 1>} : vector<2x32xi32>
    %30 = arith.sitofp %29 : vector<2x32xi32> to vector<2x32xf32>
    %cst_14 = arith.constant 0.000000e+00 : f32
    %31 = vector.broadcast %cst_14 : f32 to vector<2x32xf32>
    %32 = arith.cmpf oge, %30, %31 : vector<2x32xf32>
    %cst_15 = arith.constant 8.000000e+00 : f32
    %33 = vector.broadcast %cst_15 : f32 to vector<2x32xf32>
    %34 = arith.cmpf olt, %30, %33 : vector<2x32xf32>
    %35 = arith.andi %32, %34 : vector<2x32xi1>
    %cst_16 = arith.constant 8.000000e+00 : f32
    %36 = vector.broadcast %cst_16 : f32 to vector<2x32xf32>
    %37 = arith.cmpf oge, %30, %36 : vector<2x32xf32>
    %cst_17 = arith.constant 1.600000e+01 : f32
    %38 = vector.broadcast %cst_17 : f32 to vector<2x32xf32>
    %39 = arith.cmpf olt, %30, %38 : vector<2x32xf32>
    %40 = arith.andi %37, %39 : vector<2x32xi1>
    %cst_18 = arith.constant 1.600000e+01 : f32
    %41 = vector.broadcast %cst_18 : f32 to vector<2x32xf32>
    %42 = arith.cmpf oge, %30, %41 : vector<2x32xf32>
    %cst_19 = arith.constant 2.400000e+01 : f32
    %43 = vector.broadcast %cst_19 : f32 to vector<2x32xf32>
    %44 = arith.cmpf olt, %30, %43 : vector<2x32xf32>
    %45 = arith.andi %42, %44 : vector<2x32xi1>
    %cst_20 = arith.constant 2.400000e+01 : f32
    %46 = vector.broadcast %cst_20 : f32 to vector<2x32xf32>
    %47 = arith.cmpf oge, %30, %46 : vector<2x32xf32>
    %cst_21 = arith.constant 3.200000e+01 : f32
    %48 = vector.broadcast %cst_21 : f32 to vector<2x32xf32>
    %49 = arith.cmpf olt, %30, %48 : vector<2x32xf32>
    %50 = arith.andi %47, %49 : vector<2x32xi1>
    %cst_22 = arith.constant 0.000000e+00 : f32
    %51 = vector.broadcast %cst_22 : f32 to vector<2x32xf32>
    %cst_23 = arith.constant 0xFF800000 : f32
    %52 = vector.broadcast %cst_23 : f32 to vector<2x32xf32>
    %53 = arith.select %35, %28, %52 : vector<2x32xi1>, vector<2x32xf32>
    %cst_24 = arith.constant dense<0xFF800000> : vector<2xf32>
    %54 = vector.multi_reduction <maximumf>, %53, %cst_24 [1] : vector<2x32xf32> to vector<2xf32>
    %55 = vector.shape_cast %54 : vector<2xf32> to vector<2x1xf32>
    %56 = vector.broadcast %55 : vector<2x1xf32> to vector<2x32xf32>
    %57 = arith.cmpf oeq, %53, %56 : vector<2x32xf32>
    %cst_25 = arith.constant 3.200000e+01 : f32
    %58 = vector.broadcast %cst_25 : f32 to vector<2x32xf32>
    %59 = arith.select %57, %30, %58 : vector<2x32xi1>, vector<2x32xf32>
    %cst_26 = arith.constant dense<0x7F800000> : vector<2xf32>
    %60 = vector.multi_reduction <minimumf>, %59, %cst_26 [1] : vector<2x32xf32> to vector<2xf32>
    %61 = vector.shape_cast %60 : vector<2xf32> to vector<2x1xf32>
    %62 = vector.broadcast %61 : vector<2x1xf32> to vector<2x32xf32>
    %63 = arith.cmpf oeq, %30, %62 : vector<2x32xf32>
    %64 = arith.extui %63 : vector<2x32xi1> to vector<2x32xi32>
    %65 = arith.sitofp %64 : vector<2x32xi32> to vector<2x32xf32>
    %66 = arith.addf %51, %65 : vector<2x32xf32>
    %cst_27 = arith.constant 0xFF800000 : f32
    %67 = vector.broadcast %cst_27 : f32 to vector<2x32xf32>
    %68 = arith.select %40, %28, %67 : vector<2x32xi1>, vector<2x32xf32>
    %cst_28 = arith.constant dense<0xFF800000> : vector<2xf32>
    %69 = vector.multi_reduction <maximumf>, %68, %cst_28 [1] : vector<2x32xf32> to vector<2xf32>
    %70 = vector.shape_cast %69 : vector<2xf32> to vector<2x1xf32>
    %71 = vector.broadcast %70 : vector<2x1xf32> to vector<2x32xf32>
    %72 = arith.cmpf oeq, %68, %71 : vector<2x32xf32>
    %cst_29 = arith.constant 3.200000e+01 : f32
    %73 = vector.broadcast %cst_29 : f32 to vector<2x32xf32>
    %74 = arith.select %72, %30, %73 : vector<2x32xi1>, vector<2x32xf32>
    %cst_30 = arith.constant dense<0x7F800000> : vector<2xf32>
    %75 = vector.multi_reduction <minimumf>, %74, %cst_30 [1] : vector<2x32xf32> to vector<2xf32>
    %76 = vector.shape_cast %75 : vector<2xf32> to vector<2x1xf32>
    %77 = vector.broadcast %76 : vector<2x1xf32> to vector<2x32xf32>
    %78 = arith.cmpf oeq, %30, %77 : vector<2x32xf32>
    %79 = arith.extui %78 : vector<2x32xi1> to vector<2x32xi32>
    %80 = arith.sitofp %79 : vector<2x32xi32> to vector<2x32xf32>
    %81 = arith.addf %66, %80 : vector<2x32xf32>
    %cst_31 = arith.constant 0xFF800000 : f32
    %82 = vector.broadcast %cst_31 : f32 to vector<2x32xf32>
    %83 = arith.select %45, %28, %82 : vector<2x32xi1>, vector<2x32xf32>
    %cst_32 = arith.constant dense<0xFF800000> : vector<2xf32>
    %84 = vector.multi_reduction <maximumf>, %83, %cst_32 [1] : vector<2x32xf32> to vector<2xf32>
    %85 = vector.shape_cast %84 : vector<2xf32> to vector<2x1xf32>
    %86 = vector.broadcast %85 : vector<2x1xf32> to vector<2x32xf32>
    %87 = arith.cmpf oeq, %83, %86 : vector<2x32xf32>
    %cst_33 = arith.constant 3.200000e+01 : f32
    %88 = vector.broadcast %cst_33 : f32 to vector<2x32xf32>
    %89 = arith.select %87, %30, %88 : vector<2x32xi1>, vector<2x32xf32>
    %cst_34 = arith.constant dense<0x7F800000> : vector<2xf32>
    %90 = vector.multi_reduction <minimumf>, %89, %cst_34 [1] : vector<2x32xf32> to vector<2xf32>
    %91 = vector.shape_cast %90 : vector<2xf32> to vector<2x1xf32>
    %92 = vector.broadcast %91 : vector<2x1xf32> to vector<2x32xf32>
    %93 = arith.cmpf oeq, %30, %92 : vector<2x32xf32>
    %94 = arith.extui %93 : vector<2x32xi1> to vector<2x32xi32>
    %95 = arith.sitofp %94 : vector<2x32xi32> to vector<2x32xf32>
    %96 = arith.addf %81, %95 : vector<2x32xf32>
    %cst_35 = arith.constant 0xFF800000 : f32
    %97 = vector.broadcast %cst_35 : f32 to vector<2x32xf32>
    %98 = arith.select %50, %28, %97 : vector<2x32xi1>, vector<2x32xf32>
    %cst_36 = arith.constant dense<0xFF800000> : vector<2xf32>
    %99 = vector.multi_reduction <maximumf>, %98, %cst_36 [1] : vector<2x32xf32> to vector<2xf32>
    %100 = vector.shape_cast %99 : vector<2xf32> to vector<2x1xf32>
    %101 = vector.broadcast %100 : vector<2x1xf32> to vector<2x32xf32>
    %102 = arith.cmpf oeq, %98, %101 : vector<2x32xf32>
    %cst_37 = arith.constant 3.200000e+01 : f32
    %103 = vector.broadcast %cst_37 : f32 to vector<2x32xf32>
    %104 = arith.select %102, %30, %103 : vector<2x32xi1>, vector<2x32xf32>
    %cst_38 = arith.constant dense<0x7F800000> : vector<2xf32>
    %105 = vector.multi_reduction <minimumf>, %104, %cst_38 [1] : vector<2x32xf32> to vector<2xf32>
    %106 = vector.shape_cast %105 : vector<2xf32> to vector<2x1xf32>
    %107 = vector.broadcast %106 : vector<2x1xf32> to vector<2x32xf32>
    %108 = arith.cmpf oeq, %30, %107 : vector<2x32xf32>
    %109 = arith.extui %108 : vector<2x32xi1> to vector<2x32xi32>
    %110 = arith.sitofp %109 : vector<2x32xi32> to vector<2x32xf32>
    %111 = arith.addf %96, %110 : vector<2x32xf32>
    %112 = vector.broadcast %12 : vector<2x1xf32> to vector<2x32xf32>
    %113 = arith.mulf %111, %112 : vector<2x32xf32>
    %c0_39 = arith.constant 0 : index
    %c0_40 = arith.constant 0 : index
    %c0_41 = arith.constant 0 : index
    %114 = vector.load %arg3[%c0_39, %c0_40, %c0_41] : memref<1x2x32xf32, #tpu.memory_space<vmem>>, vector<1x2x32xf32>
    %115 = vector.shape_cast %114 : vector<1x2x32xf32> to vector<2x32xf32>
    %116 = vector.shape_cast %113 : vector<2x32xf32> to vector<1x2x32xf32>
    tpu.vector_store %arg3[%c0_39, %c0_40, %c0_41], %116 {strides = array<i32>} : memref<1x2x32xf32, #tpu.memory_space<vmem>>, vector<1x2x32xf32>,
    return
  }
  func.func @transform_0(%arg0: i32) -> (i32, i32, i32) {
    %c0_i32 = arith.constant 0 : i32
    %c0_i32_0 = arith.constant 0 : i32
    %c0_i32_1 = arith.constant 0 : i32
    return %arg0, %c0_i32, %c0_i32_0 : i32, i32, i32
  }
  func.func @transform_1(%arg0: i32) -> (i32, i32, i32) {
    %c0_i32 = arith.constant 0 : i32
    %c0_i32_0 = arith.constant 0 : i32
    %c0_i32_1 = arith.constant 0 : i32
    return %arg0, %c0_i32, %c0_i32_0 : i32, i32, i32
  }
  func.func @transform_2(%arg0: i32) -> (i32, i32, i32) {
    %c0_i32 = arith.constant 0 : i32
    %c0_i32_0 = arith.constant 0 : i32
    %c0_i32_1 = arith.constant 0 : i32
    return %arg0, %c0_i32, %c0_i32_0 : i32, i32, i32
  }
}

</mosaic_0001>

<bundles_post_ra>
// kernel: tpu_custom_call.1
= control target key start
LH: loop header
LB: loop body
LE: loop exit
PB: predicated region body
PF: predicated region fallthrough
CT: control target
= control target key end

     0   :  { %vm13_vm0 = vcmask 1041408   ;;  %s318_s0 = inlined_call_operand.vmem [shape: f32[1,2,128], index: 0, kind: input, shape index: {}]   ;;  %s319_s1 = inlined_call_operand.vmem [shape: f32[1,128,32], index: 1, kind: input, shape index: {}]   ;;  %s320_s2 = inlined_call_operand.hbm [shape: f32[1,2,32], index: 2, kind: output, shape index: {}]  }
   0x1   :  { %v12_v0 = vld [vmem:[%s318_s0] sm:$0x3]  ;;  %v66_v1 = vld [vmem:[%s319_s1 + $0x78] sm:$0xff]  ;;  %v65_v2 = vld [vmem:[%s319_s1 + $0x70] sm:$0xff] }
   0x2   :  { %v14_v3 = vsel %vm13_vm0, %v12_v0, 0.0  ;;  %67 = vmatpush.msra.mxu0 %v66_v1 }
   0x3   :  { %7 = vsyncpa [#allocation3], 0  ;;  %15 = vadd.xlane.f32.xlu0 %v14_v3  ;;  %v64_v4 = vld [vmem:[%s319_s1 + $0x68] sm:$0xff]  ;;  %v63_v5 = vld [vmem:[%s319_s1 + $0x60] sm:$0xff]  ;;  %v87_v33 = vlaneseq  ;;  %v211_v57 = vmov 4.0   ;;  %v212_v3 = vmov 0.0  }
   0x4   :  { %68 = vmatpush.msra.mxu0 %v65_v2  ;;  %v62_v6 = vld [vmem:[%s319_s1 + $0x58] sm:$0xff]  ;;  %v61_v7 = vld [vmem:[%s319_s1 + $0x50] sm:$0xff]  ;;  %v60_v8 = vld [vmem:[%s319_s1 + $0x48] sm:$0xff]  ;;  %s164_s0 = sshll.u32 %s320_s2, 4  ;;  %s165_s0 = int_to_ptr.hbm [resolvable:$true] %s164_s0 }
   0x5   :  { %v59_v9 = vld [vmem:[%s319_s1 + $0x40] sm:$0xff]  ;;  %v58_v10 = vld [vmem:[%s319_s1 + $0x38] sm:$0xff]  ;;  %v57_v11 = vld [vmem:[%s319_s1 + $0x30] sm:$0xff]  ;;  %v88_v34 = vand.u32 127, %v87_v33 }
   0x6   :  { %69 = vmatpush.msra.mxu0 %v64_v4  ;;  %v56_v12 = vld [vmem:[%s319_s1 + $0x28] sm:$0xff]  ;;  %v55_v13 = vld [vmem:[%s319_s1 + $0x20] sm:$0xff]  ;;  %v54_v14 = vld [vmem:[%s319_s1 + $0x18] sm:$0xff] }
   0x7   :  { %v53_v15 = vld [vmem:[%s319_s1 + $0x10] sm:$0xff]  ;;  %v52_v16 = vld [vmem:[%s319_s1 + $0x8] sm:$0xff]  ;;  %v51_v17 = vld [vmem:[%s319_s1] sm:$0xff]  ;;  %v287_v35 = vcvt.s32.f32 %v88_v34  ;;  %s213_s1 = smov [#allocation2]  }
   0x8   :  { %70 = vmatpush.msra.mxu0 %v63_v5  ;;  %s162_s14 = sshll.u32 %s213_s1, 4  ;;  %s163_s14 = int_to_ptr.vmem [resolvable:$true] %s162_s14 }
   0x9   :  { %vm99_vm8 = vcmp.ge.f32.partialorder %v287_v35, 24.0  ;;  %vm100_vm9 = vcmp.lt.f32.partialorder %v287_v35, 32.0  ;;  %vm93_vm10 = vcmp.ge.f32.partialorder %v287_v35, 8.0  ;;  %vm94_vm11 = vcmp.lt.f32.partialorder %v287_v35, 16.0 }
   0xa   :  { %71 = vmatpush.msra.mxu0 %v62_v6  ;;  %vm90_vm12 = vcmp.ge.f32.partialorder %v287_v35, 0.0  ;;  %vm91_vm13 = vcmp.lt.f32.partialorder %v287_v35, 8.0  ;;  %vm101_vm14 = vmand %vm99_vm8, %vm100_vm9 }
   0xb   :  { %vm95_vm15 = vmand %vm93_vm10, %vm94_vm11 }
   0xc   :  { %72 = vmatpush.msra.mxu0 %v61_v7  ;;  %vm92_vm0 = vmand %vm90_vm12, %vm91_vm13 }
   0xe   :  { %73 = vmatpush.msra.mxu0 %v60_v8 }
  0x10   :  { %74 = vmatpush.msra.mxu0 %v59_v9 }
  0x12   :  { %75 = vmatpush.msra.mxu0 %v58_v10 }
  0x14   :  { %76 = vmatpush.msra.mxu0 %v57_v11 }
  0x16   :  { %77 = vmatpush.msra.mxu0 %v56_v12 }
  0x18   :  { %78 = vmatpush.msra.mxu0 %v55_v13 }
  0x1a   :  { %79 = vmatpush.msra.mxu0 %v54_v14 }
  0x1c   :  { %80 = vmatpush.msra.mxu0 %v53_v15 }
  0x1e   :  { %81 = vmatpush.msra.mxu0 %v52_v16 }
  0x20   :  { %82 = vmatpush.msra.mxu0 %v51_v17 }
  0x76   :  { %v280_v18 = vpop.xlane.xlu0 %15 }
  0x77   :  { %181 = vrcp.f32 %v280_v18  ;;  %v41_v22 = vand.u32 2147483648, %v280_v18  ;;  %v39_v24 = vand.u32 2147483647, %v280_v18  ;;  %vm35_vm2 = vweird.f32 %v280_v18 }
  0x78   :  { %183 = vrcp.f32 %v211_v57 }
  0x79   :  { %v42_v26 = vor.u32 1.1754944e-38, %v41_v22  ;;  %vm40_vm4 = vcmp.eq.f32.partialorder %v39_v24, 8.507059e+37 }
  0x7d   :  { %v182_v19 = vpop.eup %181 }
  0x7e   :  { %v31_v20 = vmul.f32 %v182_v19, %v280_v18  ;;  %vm36_vm1 = vweird.f32 %v182_v19  ;;  %v184_v58 = vpop.eup %183 }
  0x7f   :  { %vm37_vm3 = vmor %vm35_vm2, %vm36_vm1  ;;  %vm103_vm1 = vcmask 254976   ;;  %vm96_vm2 = vcmp.ge.f32.partialorder %v287_v35, 16.0  ;;  %v18_v59 = vmul.f32 4.0, %v184_v58  ;;  %vm22_vm9 = vweird.f32 %v184_v58 }
  0x80   :  { %v32_v21 = vsub.f32 1.0, %v31_v20 }
  0x81   :  { %v19_v60 = vsub.f32 1.0, %v18_v59 }
  0x82   :  { %v33_v23 = vmul.f32 %v182_v19, %v32_v21 }
  0x83   :  { %v20_v61 = vmul.f32 %v184_v58, %v19_v60 }
  0x84   :  { %v34_v25 = vadd.f32 %v182_v19, %v33_v23 }
  0x85   :  { %v21_v62 = vadd.f32 %v184_v58, %v20_v61 }
  0x86   :  { %v38_v27 = vsel %vm37_vm3, %v182_v19, %v34_v25  ;;  %vm97_vm3 = vcmp.lt.f32.partialorder %v287_v35, 24.0 }
  0x87   :  { %v43_v28 = vsel %vm40_vm4, %v42_v26, %v38_v27  ;;  %vm98_vm4 = vmand %vm96_vm2, %vm97_vm3  ;;  %v23_v1 = vsel %vm22_vm9, %v184_v58, %v21_v62 }
  0x88   :  { %v44_v29 = vmul.f32 %v43_v28, %v12_v0  ;;  %v24_v2 = vmul.f32 %v23_v1, %v280_v18 }
  0x8a   :  { %vm45_vm5 = vcmp.ne.f32.partialorder %v44_v29, %v44_v29  ;;  %vm25_vm12 = vcmp.le.f32.partialorder %v24_v2, 4.0  ;;  %vm26_vm13 = vcmp.ge.f32.partialorder %v24_v2, 0.8 }
  0x8b   :  { %v46_v30 = vsel %vm45_vm5, 0.0, %v44_v29 }
  0x8c   :  { %vm47_vm6 = vcmp.eq.f32.partialorder %v46_v30, inf }
  0x8d   :  { %v48_v31 = vsel %vm47_vm6, 3.4028235e+38, %v46_v30 }
  0x8e   :  { %vm49_vm7 = vcmp.eq.f32.partialorder %v48_v31, -inf }
  0x8f   :  { %v50_v32 = vsel %vm49_vm7, -3.4028235e+38, %v48_v31 }
  0x90   :  { %83 = vmatmul.f32.vlgmr.msra.gmra.mxu0 %v50_v32 }
 0x10d   :  { %v84_v36 = vpop.f32.mrf.mxu0 }
 0x10e   :  { %v142_v37 = vsel %vm101_vm14, %v84_v36, -inf  ;;  %v116_v38 = vsel %vm95_vm15, %v84_v36, -inf  ;;  %v102_v39 = vsel %vm92_vm0, %v84_v36, -inf  ;;  %v129_v43 = vsel %vm98_vm4, %v84_v36, -inf  ;;  %vm27_vm0 = vmand %vm25_vm12, %vm26_vm13 }
 0x10f   :  { %v143_v40 = vsel %vm103_vm1, %v142_v37, -inf  ;;  %v117_v41 = vsel %vm103_vm1, %v116_v38, -inf  ;;  %v104_v42 = vsel %vm103_vm1, %v102_v39, -inf  ;;  %v130_v44 = vsel %vm103_vm1, %v129_v43, -inf }
 0x110   :  { %144 = vmax.xlane.f32.xlu2 %v143_v40  ;;  %118 = vmax.xlane.f32.xlu1 %v117_v41  ;;  %v173_v13 = vsel %vm27_vm0, 1.0, %v212_v3 }
 0x111   :  { %105 = vmax.xlane.f32.xlu0 %v104_v42 }
 0x118   :  { %131 = vmax.xlane.f32.xlu1 %v130_v44 }
 0x183   :  { %v119_v45 = vpop.xlane.xlu1 %118  ;;  %v145_v48 = vpop.xlane.xlu2 %144 }
 0x184   :  { %vm120_vm5 = vcmp.eq.f32.partialorder %v116_v38, %v119_v45  ;;  %v106_v46 = vpop.xlane.xlu0 %105  ;;  %vm146_vm7 = vcmp.eq.f32.partialorder %v142_v37, %v145_v48 }
 0x185   :  { %vm107_vm6 = vcmp.eq.f32.partialorder %v102_v39, %v106_v46  ;;  %v121_v47 = vsel %vm120_vm5, %v287_v35, 32.0  ;;  %v147_v53 = vsel %vm146_vm7, %v287_v35, 32.0 }
 0x186   :  { %v122_v49 = vsel %vm103_vm1, %v121_v47, inf  ;;  %v108_v50 = vsel %vm107_vm6, %v287_v35, 32.0  ;;  %v148_v56 = vsel %vm103_vm1, %v147_v53, inf }
 0x187   :  { %123 = vmin.xlane.f32.xlu0 %v122_v49  ;;  %v109_v51 = vsel %vm103_vm1, %v108_v50, inf }
 0x188   :  { %110 = vmin.xlane.f32.xlu2 %v109_v51 }
 0x18b   :  { %v132_v52 = vpop.xlane.xlu1 %131 }
 0x18c   :  { %vm133_vm8 = vcmp.eq.f32.partialorder %v129_v43, %v132_v52 }
 0x18d   :  { %v134_v54 = vsel %vm133_vm8, %v287_v35, 32.0 }
 0x18e   :  { %v135_v55 = vsel %vm103_vm1, %v134_v54, inf }
 0x18f   :  { %136 = vmin.xlane.f32.xlu1 %v135_v55 }
 0x190   :  { %149 = vmin.xlane.f32.xlu2 %v148_v56 }
 0x1fa   :  { %v124_v63 = vpop.xlane.xlu0 %123 }
 0x1fb   :  { %v111_v0 = vpop.xlane.xlu2 %110  ;;  %vm125_vm11 = vcmp.eq.f32.partialorder %v287_v35, %v124_v63 }
 0x1fc   :  { %vm112_vm10 = vcmp.eq.f32.partialorder %v287_v35, %v111_v0  ;;  %v175_v5 = vsel %vm125_vm11, 1.0, %v212_v3 }
 0x1fd   :  { %v174_v4 = vsel %vm112_vm10, 1.0, %v212_v3 }
 0x1fe   :  { %v128_v7 = vadd.f32 %v175_v5, %v174_v4 }
 0x202   :  { %v137_v6 = vpop.xlane.xlu1 %136 }
 0x203   :  { %vm138_vm14 = vcmp.eq.f32.partialorder %v287_v35, %v137_v6  ;;  %v150_v8 = vpop.xlane.xlu2 %149 }
 0x204   :  { %v176_v9 = vsel %vm138_vm14, 1.0, %v212_v3  ;;  %vm151_vm15 = vcmp.eq.f32.partialorder %v287_v35, %v150_v8 }
 0x205   :  { %v141_v10 = vadd.f32 %v176_v9, %v128_v7  ;;  %v177_v11 = vsel %vm151_vm15, 1.0, %v212_v3 }
 0x207   :  { %v154_v12 = vadd.f32 %v177_v11, %v141_v10 }
 0x209   :  { %v155_v14 = vmul.f32 %v173_v13, %v154_v12 }
 0x20b   :  { %156 = vst.msk [vmem:[#allocation2] sm:$0x3] %vm103_vm1, %v155_v14 }
 0x20c   :  { %167 = dma.vmem_to_hbm [thread:$0]  %s163_s14, 32, %s165_s0, [#allocation3]  }
 0x20d   :  { %209 = dma.done.wait [#allocation3], 32  }
 0x20e   :  { %210 = vsyncadd [#allocation3], 4294967264 }
 0x20f   :  { %172 = vsyncpa [#allocation3], 1 }

</bundles_post_ra>
